<compile_context>
chip_gen: v6e
topology: v6e:2x2x1
jax: 0.10.0
libtpu: 0.0.40
codegen_flags: <defaults>
</compile_context>

<pallas_src>
import jax
import jax.numpy as jnp
from jax import lax
from jax.experimental import pallas as pl
from jax.experimental.pallas import tpu as pltpu

EPS = 1e-5

_MOSAIC_PARAMS = pltpu.CompilerParams(
    dimension_semantics=("parallel",),
    vmem_limit_bytes=32 * 1024 * 1024,
)


# --------------------------------------------------------------------------
# kernels
# --------------------------------------------------------------------------
def _mm_bias_stats_kernel(x_ref, w_ref, b_ref, o_ref, st_ref):
    # y = x @ w + b ; emit y (f32) and per-tile [sum, sumsq] over rows.
    y = jnp.dot(x_ref[...], w_ref[...], preferred_element_type=jnp.float32)
    y = y + b_ref[...]
    o_ref[...] = y
    s = jnp.sum(y, axis=0, keepdims=True)
    sq = jnp.sum(y * y, axis=0, keepdims=True)
    st_ref[0] = jnp.concatenate([s, sq], axis=0)


def _affine_relu_mm_bias_stats_kernel(x_ref, a_ref, c_ref, w_ref, b_ref,
                                      o_ref, st_ref):
    # y = relu(x * a + c) @ w + b ; BN of the previous layer is folded into
    # (a, c) so no extra pass over the activation is needed.
    xn = jnp.maximum(x_ref[...] * a_ref[...] + c_ref[...], 0.0)
    y = jnp.dot(xn.astype(w_ref.dtype), w_ref[...],
                preferred_element_type=jnp.float32)
    y = y + b_ref[...]
    o_ref[...] = y
    s = jnp.sum(y, axis=0, keepdims=True)
    sq = jnp.sum(y * y, axis=0, keepdims=True)
    st_ref[0] = jnp.concatenate([s, sq], axis=0)


def _residual_kernel(y3_ref, sc_ref, s3_ref, t3_ref, ss_ref, ts_ref, o_ref):
    # out = relu( (sc*ss+ts) + relu(y3*s3+t3) ), lane-folded layout.
    main = jnp.maximum(y3_ref[...] * s3_ref[...] + t3_ref[...], 0.0)
    sc = sc_ref[...] * ss_ref[...] + ts_ref[...]
    o_ref[...] = jnp.maximum(sc + main, 0.0)


# --------------------------------------------------------------------------
# tiling helpers / pallas_call wrappers
# --------------------------------------------------------------------------
def _pick_rows(m, target=256):
    """Largest divisor of m that is <= target and sublane-friendly."""
    for align in (16, 8):
        d = min(m, target)
        d -= d % align
        while d >= align:
            if m % d == 0:
                return d
            d -= align
    return m


def _tiled_matmul_stats(x, w, b, *, prologue=None, row_block=256):
    """Row-tiled  y = [relu(x*scale+shift)] @ w + b, plus summed BN stats."""
    M, K = x.shape
    C = w.shape[1]
    tm = _pick_rows(M, row_block)
    T = M // tm
    b2 = b.reshape(1, -1).astype(jnp.float32)

    if prologue is None:
        kernel = _mm_bias_stats_kernel
        args = (x, w, b2)
        in_specs = [
            pl.BlockSpec((tm, K), lambda i: (i, 0)),
            pl.BlockSpec((K, C), lambda i: (0, 0)),
            pl.BlockSpec((1, C), lambda i: (0, 0)),
        ]
    else:
        scale, shift = prologue
        kernel = _affine_relu_mm_bias_stats_kernel
        args = (x, scale, shift, w, b2)
        in_specs = [
            pl.BlockSpec((tm, K), lambda i: (i, 0)),
            pl.BlockSpec((1, K), lambda i: (0, 0)),
            pl.BlockSpec((1, K), lambda i: (0, 0)),
            pl.BlockSpec((K, C), lambda i: (0, 0)),
            pl.BlockSpec((1, C), lambda i: (0, 0)),
        ]

    y, stats = pl.pallas_call(
        kernel,
        out_shape=(jax.ShapeDtypeStruct((M, C), jnp.float32),
                   jax.ShapeDtypeStruct((T, 2, C), jnp.float32)),
        grid=(T,),
        in_specs=in_specs,
        out_specs=(pl.BlockSpec((tm, C), lambda i: (i, 0)),
                   pl.BlockSpec((1, 2, C), lambda i: (i, 0, 0))),
        compiler_params=_MOSAIC_PARAMS,
    )(*args)
    return y, jnp.sum(stats, axis=0)


def _tiled_residual(y3, sc, s3, t3, ss, ts, *, row_block=256):
    M, C = y3.shape
    tm = _pick_rows(M, row_block)
    T = M // tm
    row_spec = pl.BlockSpec((tm, C), lambda i: (i, 0))
    par_spec = pl.BlockSpec((1, C), lambda i: (0, 0))
    return pl.pallas_call(
        _residual_kernel,
        out_shape=jax.ShapeDtypeStruct((M, C), jnp.float32),
        grid=(T,),
        in_specs=[row_spec, row_spec, par_spec, par_spec, par_spec, par_spec],
        out_specs=pl.BlockSpec((tm, C), lambda i: (i, 0)),
        compiler_params=_MOSAIC_PARAMS,
    )(y3, sc, s3, t3, ss, ts)


def _bn_scale_shift(stats, count, gamma, beta):
    """Fold training-mode BN (biased var, E[y^2]-E[y]^2) into scale/shift."""
    mean = stats[0] / count
    var = jnp.maximum(stats[1] / count - mean * mean, 0.0)
    scale = gamma.astype(jnp.float32) * lax.rsqrt(var + EPS)
    shift = beta.astype(jnp.float32) - mean * scale
    return scale.reshape(1, -1), shift.reshape(1, -1)


# --------------------------------------------------------------------------
# GroupBlock forward
# --------------------------------------------------------------------------
def group_block_forward(x_nchw, params, *, stride, cardinality,
                        bottleneck_width, expansion, row_block=256):
    f32, bf16 = jnp.float32, jnp.bfloat16
    N, Cin, H, W = x_nchw.shape
    Cg = cardinality * bottleneck_width
    Ce = Cg * expansion
    Ho = (H + 2 - 3) // stride + 1
    Wo = (W + 2 - 3) // stride + 1
    M1 = N * H * W
    M2 = N * Ho * Wo
    has_shortcut = (stride != 1) or (Cin != Ce)

    x_nhwc = jnp.transpose(x_nchw, (0, 2, 3, 1)).astype(f32)
    x_flat = x_nhwc.reshape(M1, Cin)

    # ---- stage 1: conv1 (1x1) + per-tile BN stats --------------------------
    w1 = jnp.transpose(params['conv1_w'].reshape(Cg, Cin)).astype(bf16)
    y1_raw, st1 = _tiled_matmul_stats(x_flat.astype(bf16), w1,
                                      params['conv1_b'], row_block=row_block)
    scale1, shift1 = _bn_scale_shift(st1, M1, params['bn1_g'], params['bn1_b'])

    # ---- glue: bn1+relu (folded affine), pad, im2col -> (M2, 9*Cg) bf16 ----
    # TODO(synk): do this halo/tap extraction in-kernel to kill the 9x buffer.
    y1n = jnp.maximum(y1_raw * scale1 + shift1, 0.0)
    y1_pad = jnp.pad(y1n.reshape(N, H, W, Cg), ((0, 0), (1, 1), (1, 1), (0, 0)))
    taps = [y1_pad[:, kh:kh + stride * Ho:stride,
                   kw:kw + stride * Wo:stride, :].reshape(M2, Cg)
            for kh in range(3) for kw in range(3)]
    lhs2 = jnp.concatenate(taps, axis=-1).astype(bf16)          # (M2, 9*Cg)

    # grouped 3x3 weights -> one (9*Cg, Cg) block matrix (single K=9*Cg dot)
    bw = bottleneck_width
    w2_perm = jnp.transpose(params['conv2_w'], (2, 3, 1, 0)).reshape(9, bw, Cg)
    rows = (jnp.arange(Cg) // bw)[None, :] * bw + jnp.arange(bw)[:, None]
    cols = jnp.arange(Cg)[None, :]
    w2_bd = jnp.zeros((9, Cg, Cg), f32).at[:, rows, cols].set(w2_perm)
    w2_cat = w2_bd.reshape(9 * Cg, Cg).astype(bf16)

    # ---- stage 2: grouped conv (one matmul) + per-tile BN stats ------------
    y2_raw, st2 = _tiled_matmul_stats(lhs2, w2_cat, params['conv2_b'],
                                      row_block=row_block)
    scale2, shift2 = _bn_scale_shift(st2, M2, params['bn2_g'], params['bn2_b'])

    # ---- stage 3: bn2+relu prologue fused into the conv3 matmul ------------
    w3 = jnp.transpose(params['conv3_w'].reshape(Ce, Cg)).astype(bf16)
    y3_raw, st3 = _tiled_matmul_stats(y2_raw, w3, params['conv3_b'],
                                      prologue=(scale2, shift2),
                                      row_block=row_block)
    scale3, shift3 = _bn_scale_shift(st3, M2, params['bn3_g'], params['bn3_b'])

    # ---- shortcut branch ---------------------------------------------------
    if has_shortcut:
        ws = jnp.transpose(params['convs_w'].reshape(Ce, Cin)).astype(bf16)
        xs = x_nhwc[:, 0:stride * Ho:stride,
                    0:stride * Wo:stride, :].reshape(M2, Cin)
        sc_raw, sts = _tiled_matmul_stats(xs.astype(bf16), ws,
                                          params['convs_b'],
                                          row_block=row_block)
        scale_s, shift_s = _bn_scale_shift(sts, M2,
                                           params['bns_g'], params['bns_b'])
    else:
        sc_raw = x_flat                      # identity (Cin==Ce, stride==1)
        scale_s = jnp.ones((1, Ce), f32)
        shift_s = jnp.zeros((1, Ce), f32)

    # ---- final: bn3+relu, shortcut bn, add, relu (lane-folded stores) ------
    fold = 1
    if Ce < 128 and M2 % (128 // Ce) == 0:
        fold = 128 // Ce
    Mf = M2 // fold
    tile_p = lambda p: jnp.tile(p, (1, fold))
    out_f = _tiled_residual(
        y3_raw.reshape(Mf, fold * Ce), sc_raw.reshape(Mf, fold * Ce),
        tile_p(scale3), tile_p(shift3), tile_p(scale_s), tile_p(shift_s),
        row_block=row_block)

    out = out_f.reshape(N, Ho, Wo, Ce)
    return jnp.transpose(out, (0, 3, 1, 2))


# --------------------------------------------------------------------------
# pure-JAX reference (training-mode BN, matches the PyTorch module)
# --------------------------------------------------------------------------
def reference_forward(x, p, stride, cardinality):
    def conv(x, w, b, s, pad, groups=1):
        y = lax.conv_general_dilated(
            x, w, (s, s), [(pad, pad), (pad, pad)],
            dimension_numbers=('NCHW', 'OIHW', 'NCHW'),
            feature_group_count=groups)
        return y + b[None, :, None, None]

    def bn(y, g, b):
        m = jnp.mean(y, axis=(0, 2, 3), keepdims=True)
        v = jnp.mean(jnp.square(y - m), axis=(0, 2, 3), keepdims=True)
        return (y - m) / jnp.sqrt(v + EPS) * g[None, :, None, None] \
            + b[None, :, None, None]

    relu = lambda z: jnp.maximum(z, 0.0)
    o = relu(bn(conv(x, p['conv1_w'], p['conv1_b'], 1, 0), p['bn1_g'], p['bn1_b']))
    o = relu(bn(conv(o, p['conv2_w'], p['conv2_b'], stride, 1, cardinality),
                p['bn2_g'], p['bn2_b']))
    o = relu(bn(conv(o, p['conv3_w'], p['conv3_b'], 1, 0), p['bn3_g'], p['bn3_b']))
    sc = bn(conv(x, p['convs_w'], p['convs_b'], stride, 0), p['bns_g'], p['bns_b'])
    return relu(sc + o)


# --------------------------------------------------------------------------
if __name__ == "__main__":
    N, Cin, H, W = 2, 16, 16, 16
    stride, cardinality, bottleneck_width, expansion = 2, 8, 4, 2
    Cg = cardinality * bottleneck_width      # 32
    Ce = Cg * expansion                      # 64

    key = jax.random.PRNGKey(0)
    ks = jax.random.split(key, 20)
    nrm = lambda k, s, sc=0.1: sc * jax.random.normal(k, s, jnp.float32)

    params = dict(
        conv1_w=nrm(ks[0], (Cg, Cin, 1, 1)),
        conv1_b=nrm(ks[1], (Cg,)),
        bn1_g=1.0 + nrm(ks[2], (Cg,)),
        bn1_b=nrm(ks[3], (Cg,)),
        conv2_w=nrm(ks[4], (Cg, bottleneck_width, 3, 3)),
        conv2_b=nrm(ks[5], (Cg,)),
        bn2_g=1.0 + nrm(ks[6], (Cg,)),
        bn2_b=nrm(ks[7], (Cg,)),
        conv3_w=nrm(ks[8], (Ce, Cg, 1, 1)),
        conv3_b=nrm(ks[9], (Ce,)),
        bn3_g=1.0 + nrm(ks[10], (Ce,)),
        bn3_b=nrm(ks[11], (Ce,)),
        convs_w=nrm(ks[12], (Ce, Cin, 1, 1)),
        convs_b=nrm(ks[13], (Ce,)),
        bns_g=1.0 + nrm(ks[14], (Ce,)),
        bns_b=nrm(ks[15], (Ce,)),
    )
    x = jax.random.normal(ks[16], (N, Cin, H, W), jnp.float32)

    out = group_block_forward(
        x, params, stride=stride, cardinality=cardinality,
        bottleneck_width=bottleneck_width, expansion=expansion)
    out = jax.block_until_ready(out)

    ref = reference_forward(x, params, stride, cardinality)
    assert out.shape == ref.shape, (out.shape, ref.shape)
    max_err = float(jnp.max(jnp.abs(out - ref)))
    # bf16 MXU operands (f32 accumulation / f32 BN stats) -> relaxed tolerance.
    assert jnp.allclose(out, ref, atol=5e-2, rtol=5e-2), max_err

    print("KERNEL_OK")
</pallas_src>

<mosaic_0001>
module attributes {stable_mosaic.version = 11 : i64} {
  func.func @_mm_bias_stats_kernel(%arg0: i32, %arg1: memref<256x16xbf16, #tpu.memory_space<vmem>>, %arg2: memref<16x32xbf16, #tpu.memory_space<vmem>>, %arg3: memref<1x32xf32, #tpu.memory_space<vmem>>, %arg4: memref<256x32xf32, #tpu.memory_space<vmem>>, %arg5: memref<1x2x32xf32, #tpu.memory_space<vmem>>) attributes {dimension_semantics = [#tpu.dimension_semantics<parallel>], iteration_bounds = array<i64: 2>, scalar_prefetch = 0 : i64, scratch_operands = 0 : i64, tpu.core_type = #tpu.core_type<tc>, window_params = [{transform_indices = @transform_0, window_bounds = array<i64: 256, 16>}, {pipeline_mode = #tpu.pipeline_mode<synchronous>, transform_indices = @transform_1, window_bounds = array<i64: 16, 32>}, {pipeline_mode = #tpu.pipeline_mode<synchronous>, transform_indices = @transform_2, window_bounds = array<i64: 1, 32>}, {transform_indices = @transform_3, window_bounds = array<i64: 256, 32>}, {transform_indices = @transform_4, window_bounds = array<i64: 1, 2, 32>}]} {
    %c0 = arith.constant 0 : index
    %c0_0 = arith.constant 0 : index
    %0 = vector.load %arg1[%c0, %c0_0] : memref<256x16xbf16, #tpu.memory_space<vmem>>, vector<256x16xbf16>
    %c0_1 = arith.constant 0 : index
    %c0_2 = arith.constant 0 : index
    %1 = vector.load %arg2[%c0_1, %c0_2] : memref<16x32xbf16, #tpu.memory_space<vmem>>, vector<16x32xbf16>
    %cst = arith.constant dense<0.000000e+00> : vector<256x32xf32>
    %2 = tpu.matmul %0, %1, %cst {dimension_numbers = #tpu.dot_dimension_numbers<[1], [0], [0], [1], [0, 0, 1, 1], [], []>} : vector<256x16xbf16>, vector<16x32xbf16>, vector<256x32xf32> -> vector<256x32xf32>
    %c0_3 = arith.constant 0 : index
    %c0_4 = arith.constant 0 : index
    %3 = vector.load %arg3[%c0_3, %c0_4] : memref<1x32xf32, #tpu.memory_space<vmem>>, vector<1x32xf32>
    %4 = vector.broadcast %3 : vector<1x32xf32> to vector<256x32xf32>
    %5 = arith.addf %2, %4 : vector<256x32xf32>
    %c0_5 = arith.constant 0 : index
    %c0_6 = arith.constant 0 : index
    %6 = vector.load %arg4[%c0_5, %c0_6] : memref<256x32xf32, #tpu.memory_space<vmem>>, vector<256x32xf32>
    tpu.vector_store %arg4[%c0_5, %c0_6], %5 {strides = array<i32>} : memref<256x32xf32, #tpu.memory_space<vmem>>, vector<256x32xf32>,
    %cst_7 = arith.constant dense<0.000000e+00> : vector<32xf32>
    %7 = vector.multi_reduction <add>, %5, %cst_7 [0] : vector<256x32xf32> to vector<32xf32>
    %8 = vector.shape_cast %7 : vector<32xf32> to vector<1x32xf32>
    %9 = arith.mulf %5, %5 : vector<256x32xf32>
    %cst_8 = arith.constant dense<0.000000e+00> : vector<32xf32>
    %10 = vector.multi_reduction <add>, %9, %cst_8 [0] : vector<256x32xf32> to vector<32xf32>
    %11 = vector.shape_cast %10 : vector<32xf32> to vector<1x32xf32>
    %12 = tpu.concatenate %8, %11 in 0 : vector<1x32xf32>, vector<1x32xf32> -> vector<2x32xf32>
    %c0_9 = arith.constant 0 : index
    %c0_10 = arith.constant 0 : index
    %c0_11 = arith.constant 0 : index
    %13 = vector.load %arg5[%c0_9, %c0_10, %c0_11] : memref<1x2x32xf32, #tpu.memory_space<vmem>>, vector<1x2x32xf32>
    %14 = vector.shape_cast %13 : vector<1x2x32xf32> to vector<2x32xf32>
    %15 = vector.shape_cast %12 : vector<2x32xf32> to vector<1x2x32xf32>
    tpu.vector_store %arg5[%c0_9, %c0_10, %c0_11], %15 {strides = array<i32>} : memref<1x2x32xf32, #tpu.memory_space<vmem>>, vector<1x2x32xf32>,
    return
  }
  func.func @transform_0(%arg0: i32) -> (i32, i32) {
    %c0_i32 = arith.constant 0 : i32
    %c0_i32_0 = arith.constant 0 : i32
    return %arg0, %c0_i32 : i32, i32
  }
  func.func @transform_1(%arg0: i32) -> (i32, i32) {
    %c0_i32 = arith.constant 0 : i32
    %c0_i32_0 = arith.constant 0 : i32
    %c0_i32_1 = arith.constant 0 : i32
    return %c0_i32, %c0_i32_0 : i32, i32
  }
  func.func @transform_2(%arg0: i32) -> (i32, i32) {
    %c0_i32 = arith.constant 0 : i32
    %c0_i32_0 = arith.constant 0 : i32
    %c0_i32_1 = arith.constant 0 : i32
    return %c0_i32, %c0_i32_0 : i32, i32
  }
  func.func @transform_3(%arg0: i32) -> (i32, i32) {
    %c0_i32 = arith.constant 0 : i32
    %c0_i32_0 = arith.constant 0 : i32
    return %arg0, %c0_i32 : i32, i32
  }
  func.func @transform_4(%arg0: i32) -> (i32, i32, i32) {
    %c0_i32 = arith.constant 0 : i32
    %c0_i32_0 = arith.constant 0 : i32
    %c0_i32_1 = arith.constant 0 : i32
    return %arg0, %c0_i32, %c0_i32_0 : i32, i32, i32
  }
}

</mosaic_0001>

<bundles_post_ra>
// kernel: tpu_custom_call.1
= control target key start
LH: loop header
LB: loop body
LE: loop exit
PB: predicated region body
PF: predicated region fallthrough
CT: control target
= control target key end

     0   :  { %10 = vsyncpa [#allocation3], 0  ;;  %s1480_s0 = inlined_call_operand.vmem [shape: bf16[512,16], index: 0, kind: input, shape index: {}]   ;;  %s1481_s1 = inlined_call_operand.vmem [shape: bf16[16,32], index: 1, kind: input, shape index: {}]   ;;  %s1482_s2 = inlined_call_operand.vmem [shape: f32[1,32], index: 2, kind: input, shape index: {}]   ;;  %s1483_s3 = inlined_call_operand.vmem [shape: f32[512,32], index: 3, kind: output, shape index: {0}]   ;;  %s1484_s4 = inlined_call_operand.hbm [shape: f32[2,2,32], index: 4, kind: output, shape index: {1}]  }
   0x1   :  { %12 = vsyncpa [#allocation3 + $0x1], 0  ;;  %s1108_s15 = smov 0   ;;  %s1110_s16 = smov 0  }
   0x2   :  { %s1112_s17 = smov 0   ;;  %s1114_s18 = smov 0  }
   0x3 LB: > { %s863_s19 = sadd.s32 4294967295, %s1080_s18   ;;  %s864_s20 = sadd.s32 4294967294, %s1080_s18   ;;  %s1080_s18 = sphi %s1114_s18, %s1490_s18   ;;  %s1076_s17 = sphi %s1112_s17, %s1489_s17   ;;  %s1072_s16 = sphi %s1110_s16, %s1488_s16   ;;  %s1068_s15 = sphi %s1108_s15, %s1487_s15  }
   0x4   : > { %s1131_s21 = sadd.s32 1, %s1080_s18   ;;  %s119_s22 = sadd.s32 1, %s1076_s17 }
   0x5   : > { %s116_s23 = ssub.s32 %s1080_s18, %s1131_s21  ;;  %p129_p0 = scmp.ne.s32.totalorder %s1076_s17, %s1072_s16 }
   0x6   : > { %p117_p1 = scmp.eq.s32.totalorder %s116_s23, 0  ;;  %p130_p2 = scmp.eq.s32.totalorder %s863_s19, 1 }
   0x7   : > { %p135_p3 = scmp.ne.s32.totalorder %s1072_s16, %s1068_s15  ;;  %p136_p4 = scmp.eq.s32.totalorder %s864_s20, 1 }
   0x8   : > { %s1141_s24 = scalar_select %p117_p1, %s1076_s17, %s119_s22  }
   0x9   : > { %p1143_p5 = por %p130_p2, %p129_p0  ;;  %p1147_p6 = por %p136_p4, %p135_p3 }
   0xa   : > { %p867_p7 = scmp.ge.s32.totalorder %s1080_s18, 1  ;;  %p169_p8 = scmp.lt.s32.totalorder %s1080_s18, 3 }
   0xc   : > { %p170_p9 = pnand %p867_p7, %p169_p8 }
   0xd   : > { %s1156_s29 = sshll.u32 (!%p170_p9), %s863_s19, 5  ;;  %s197_s19 = sand.u32 (!%p170_p9), 1, %s1072_s16  }
   0xe   : > { %173 = sbr.rel (%p170_p9) target bundleno = 317 (0x13d), region = 32  ;;  %p201_p10 = scmp.lt.s32.totalorder (!%p170_p9), %s1156_s29, 63 }
   0xf   : > { %s868_s20 = sshll.u32 (!%p170_p9), %s197_s19, 1  ;;  %s1082_s7 = smov (!%p170_p9), [#allocation2]  }
  0x10   : > { %s199_s22 = scalar_lea.vmem (!%p170_p9), [#allocation2], %s868_s20 }
  0x11   : > { %s780_s23 = sshll.u32 (!%p170_p9), %s199_s22, 4  ;;  %s781_s23 = int_to_ptr.vmem [resolvable:$true] %s780_s23 }
  0x12   : > { %s1020_s6 = scalar_lea.vmem (!%p170_p9), %s781_s23, 32 }
  0x13   : > { %v1003_v0 = vld [vmem:[%s1481_s1] sm:$0xff]   ;;  %s1160_s30 = scalar_select %p201_p10, %s1156_s29, 63  ;;  %vm340_vm0 = vcmask 130048   ;;  %vm550_vm1 = vcmask 261120   ;;  %vm753_vm2 = vcmask 1040384   ;;  %vm755_vm3 = vcmask 254976  }
  0x14   : > { %928 = vmatprep.subr.bf16.mxu0 %v1003_v0  ;;  %962 = vmatprep.subr.bf16.mxu1 %v1003_v0  ;;  %v1204_v17 = vld [vmem:[%s1482_s2] ss:$0 sm:$0xff]  ;;  %p1021_p11 = scmp.ne.s32.totalorder %s781_s23, %s1020_s6 }
  0x15   : > { %929 = vmatpush3.bf16.msra.mxu0 %v1003_v0  ;;  %963 = vmatpush3.bf16.msra.mxu1 %v1003_v0  ;;  %s870_s5 = sshll.u32 %s1160_s30, 2  ;;  %s872_s9 = sshll.u32 %s1160_s30, 3 }
  0x16   : > { %s1166_s8 = scalar_lea.vmem %s1480_s0, %s870_s5  ;;  %s1209_s14 = scalar_lea.vmem %s1483_s3, %s872_s9 }
  0x17   : > { %v1004_v1 = vld [vmem:[%s1166_s8] sm:$0xff]   ;;  %v1005_v2 = vld [vmem:[%s1166_s8 + $0x8] sm:$0xff]   ;;  %v1006_v3 = vld [vmem:[%s1166_s8 + $0x10] sm:$0xff]   ;;  %s1445_s30 = scalar_lea.hbm %s1484_s4, %s1156_s29  ;;  %s763_s5 = scalar_lea.sflag [#allocation3], %s197_s19 }
  0x18   : > { %930 = vmatprep.mubr.msk.bf16.mxu0 %vm340_vm0, %v1004_v1  ;;  %v1007_v4 = vld [vmem:[%s1166_s8 + $0x18] sm:$0xff]   ;;  %v1008_v5 = vld [vmem:[%s1166_s8 + $0x20] sm:$0xff]   ;;  %v1013_v7 = vld [vmem:[%s1166_s8 + $0x48] sm:$0xff]   ;;  %p1022_p12 = pnand %p1021_p11, %p1143_p5 }
  0x19   : > { %931 = vmatmul.mubr.msk.bf16.vlgmr.msra.gmra.mxu0 %vm340_vm0, %v1005_v2  ;;  %v1012_v6 = vld [vmem:[%s1166_s8 + $0x40] sm:$0xff]   ;;  %v1014_v8 = vld [vmem:[%s1166_s8 + $0x50] sm:$0xff]   ;;  %v1009_v9 = vld [vmem:[%s1166_s8 + $0x28] sm:$0xff]  }
  0x1a   : > { %934 = vmatprep.mubr.msk.bf16.mxu0 %vm340_vm0, %v1006_v3  ;;  %946 = vmatprep.mubr.msk.bf16.mxu1 %vm340_vm0, %v1012_v6  ;;  %v1015_v10 = vld [vmem:[%s1166_s8 + $0x58] sm:$0xff]   ;;  %v1010_v11 = vld [vmem:[%s1166_s8 + $0x30] sm:$0xff]   ;;  %v1016_v12 = vld [vmem:[%s1166_s8 + $0x60] sm:$0xff]   ;;  %p1023_p13 = pneg %p1022_p12 }
  0x1b   : > { %947 = vmatmul.mubr.msk.bf16.vlgmr.msra.gmra.mxu1 %vm340_vm0, %v1013_v7  ;;  %v1011_v13 = vld [vmem:[%s1166_s8 + $0x38] sm:$0xff]   ;;  %v1017_v14 = vld [vmem:[%s1166_s8 + $0x68] sm:$0xff]   ;;  %v1018_v15 = vld [vmem:[%s1166_s8 + $0x70] sm:$0xff]  }
  0x1c   : > { %950 = vmatprep.mubr.msk.bf16.mxu1 %vm340_vm0, %v1014_v8  ;;  %v1019_v16 = vld [vmem:[%s1166_s8 + $0x78] sm:$0xff]   ;;  %s1024_s8 = sshll.u32 %s1082_s7, 4  ;;  %s1025_s8 = int_to_ptr.vmem [resolvable:$false] %s1024_s8 }
  0x1d   : > { %s1026_s9 = scalar_lea.vmem %s1025_s8, 64  ;;  %p1027_p0 = scmp.lt.s32.totalorder %s781_s23, %s1025_s8 }
  0x1e   : > { %p1028_p1 = scmp.lt.s32.totalorder %s1026_s9, %s1020_s6 }
  0x20   : > { %p1029_p2 = por %p1028_p1, %p1027_p0 }
  0x21   : > { %935 = vmatmul.mubr.msk.bf16.gmra.mxu0 %vm340_vm0, %v1007_v4 }
  0x22   : > { %938 = vmatprep.mubr.msk.bf16.mxu0 %vm340_vm0, %v1008_v5  ;;  %p1030_p3 = pnand %p1029_p2, %p1023_p13 }
  0x23   : > { %951 = vmatmul.mubr.msk.bf16.gmra.mxu1 %vm340_vm0, %v1015_v10 }
  0x24   : > { %954 = vmatprep.mubr.msk.bf16.mxu1 %vm340_vm0, %v1016_v12 }
  0x29   : > { %939 = vmatmul.mubr.msk.bf16.gmra.mxu0 %vm340_vm0, %v1009_v9 }
  0x2a   : > { %942 = vmatprep.mubr.msk.bf16.mxu0 %vm340_vm0, %v1010_v11 }
  0x2b   : > { %955 = vmatmul.mubr.msk.bf16.gmra.mxu1 %vm340_vm0, %v1017_v14 }
  0x2c   : > { %958 = vmatprep.mubr.msk.bf16.mxu1 %vm340_vm0, %v1018_v15 }
  0x31   : > { %943 = vmatmul.mubr.msk.bf16.gmra.mxu0 %vm340_vm0, %v1011_v13 }
  0x33   : > { %959 = vmatmul.mubr.msk.bf16.gmra.mxu1 %vm340_vm0, %v1019_v16 }
  0xd9   : > { %v932_v18 = vpop.f32.mrf.mxu0 }
  0xda   : > { %v432_v19 = vadd.f32 %v932_v18, %v1204_v17 }
  0xdb   : > { %v423_v20 = vpop.f32.mrf.mxu0  ;;  %v948_v29 = vpop.f32.mrf.mxu1 }
  0xdc   : > { %553 = vst.msk [vmem:[%s1209_s14 + $0x10] sm:$0xff] %vm550_vm1, %v432_v19  ;;  %v424_v21 = vadd.f32 %v1204_v17, %v423_v20  ;;  %v654_v27 = vmul.f32 %v432_v19, %v432_v19  ;;  %v586_v34 = vsel %vm550_vm1, %v432_v19, 0.0  ;;  %v1228_v37 = vadd.f32 %v948_v29, %v1204_v17 }
  0xdd   : > { %v933_v22 = vpop.f32.mrf.mxu0  ;;  %v487_v38 = vpop.f32.mrf.mxu1 }
  0xde   : > { %551 = vst.msk [vmem:[%s1209_s14] sm:$0xff] %vm550_vm1, %v424_v21  ;;  %v435_v23 = vadd.f32 %v933_v22, %v1204_v17  ;;  %v652_v25 = vmul.f32 %v424_v21, %v424_v21  ;;  %v583_v30 = vsel %vm550_vm1, %v424_v21, 0.0  ;;  %569 = vst.msk [vmem:[%s1209_s14 + $0x90] sm:$0xff] %vm550_vm1, %v1228_v37  ;;  %v687_v47 = vsel %vm550_vm1, %v654_v27, 0.0 }
  0xdf   : > { %v426_v24 = vpop.f32.mrf.mxu0  ;;  %v949_v46 = vpop.f32.mrf.mxu1  ;;  %v1244_v54 = vadd.f32 %v1204_v17, %v487_v38 }
  0xe0   : > { %554 = vst.msk [vmem:[%s1209_s14 + $0x18] sm:$0xff] %vm550_vm1, %v435_v23  ;;  %v427_v26 = vadd.f32 %v1204_v17, %v426_v24  ;;  %v684_v39 = vsel %vm550_vm1, %v652_v25, 0.0  ;;  %v655_v40 = vmul.f32 %v435_v23, %v435_v23  ;;  %v588_v48 = vsel %vm550_vm1, %v435_v23, 0.0 }
  0xe1   : > { %v936_v28 = vpop.f32.mrf.mxu0  ;;  %v490_v55 = vpop.f32.mrf.mxu1  ;;  %567 = vst.msk [vmem:[%s1209_s14 + $0x80] sm:$0xff] %vm550_vm1, %v1244_v54  ;;  %v1260_v7 = vadd.f32 %v949_v46, %v1204_v17 }
  0xe2   : > { %552 = vst.msk [vmem:[%s1209_s14 + $0x8] sm:$0xff] %vm550_vm1, %v427_v26  ;;  %v584_v31 = vsel %vm550_vm1, %v427_v26, 0.0  ;;  %v653_v32 = vmul.f32 %v427_v26, %v427_v26  ;;  %v448_v33 = vadd.f32 %v936_v28, %v1204_v17  ;;  %v689_v56 = vsel %vm550_vm1, %v655_v40, 0.0 }
  0xe3   : > { %v585_v35 = vadd.f32 %v584_v31, %v583_v30  ;;  %v439_v36 = vpop.f32.mrf.mxu0  ;;  %v952_v63 = vpop.f32.mrf.mxu1  ;;  %570 = vst.msk [vmem:[%s1209_s14 + $0x98] sm:$0xff] %vm550_vm1, %v1260_v7  ;;  %v1278_v25 = vadd.f32 %v1204_v17, %v490_v55 }
  0xe4   : > { %v685_v41 = vsel %vm550_vm1, %v653_v32, 0.0  ;;  %557 = vst.msk [vmem:[%s1209_s14 + $0x30] sm:$0xff] %vm550_vm1, %v448_v33  ;;  %v440_v42 = vadd.f32 %v1204_v17, %v439_v36  ;;  %v658_v59 = vmul.f32 %v448_v33, %v448_v33  ;;  %v594_v9 = vsel %vm550_vm1, %v448_v33, 0.0 }
  0xe5   : > { %v587_v43 = vadd.f32 %v586_v34, %v585_v35  ;;  %v686_v44 = vadd.f32 %v685_v41, %v684_v39  ;;  %v937_v45 = vpop.f32.mrf.mxu0  ;;  %v503_v8 = vpop.f32.mrf.mxu1  ;;  %568 = vst.msk [vmem:[%s1209_s14 + $0x88] sm:$0xff] %vm550_vm1, %v1278_v25 }
  0xe6   : > { %555 = vst.msk [vmem:[%s1209_s14 + $0x20] sm:$0xff] %vm550_vm1, %v440_v42  ;;  %v656_v49 = vmul.f32 %v440_v42, %v440_v42  ;;  %v451_v50 = vadd.f32 %v937_v45, %v1204_v17  ;;  %v590_v57 = vsel %vm550_vm1, %v440_v42, 0.0  ;;  %v695_v18 = vsel %vm550_vm1, %v658_v59, 0.0 }
  0xe7   : > { %v688_v51 = vadd.f32 %v687_v47, %v686_v44  ;;  %v589_v52 = vadd.f32 %v588_v48, %v587_v43  ;;  %v442_v53 = vpop.f32.mrf.mxu0  ;;  %v1270_v16 = vpop.f32.mrf.mxu1  ;;  %v1294_v43 = vadd.f32 %v952_v63, %v1204_v17 }
  0xe8   : > { %558 = vst.msk [vmem:[%s1209_s14 + $0x38] sm:$0xff] %vm550_vm1, %v451_v50  ;;  %v443_v58 = vadd.f32 %v1204_v17, %v442_v53  ;;  %v691_v0 = vsel %vm550_vm1, %v656_v49, 0.0  ;;  %v659_v10 = vmul.f32 %v451_v50, %v451_v50  ;;  %v596_v19 = vsel %vm550_vm1, %v451_v50, 0.0 }
  0xe9   : > { %v591_v60 = vadd.f32 %v590_v57, %v589_v52  ;;  %v690_v61 = vadd.f32 %v689_v56, %v688_v51  ;;  %v940_v62 = vpop.f32.mrf.mxu0  ;;  %v506_v26 = vpop.f32.mrf.mxu1  ;;  %573 = vst.msk [vmem:[%s1209_s14 + $0xb0] sm:$0xff] %vm550_vm1, %v1294_v43 }
  0xea   : > { %556 = vst.msk [vmem:[%s1209_s14 + $0x28] sm:$0xff] %vm550_vm1, %v443_v58  ;;  %v592_v1 = vsel %vm550_vm1, %v443_v58, 0.0  ;;  %v657_v2 = vmul.f32 %v443_v58, %v443_v58  ;;  %v464_v3 = vadd.f32 %v940_v62, %v1204_v17  ;;  %v697_v27 = vsel %vm550_vm1, %v659_v10, 0.0 }
  0xeb   : > { %v692_v4 = vadd.f32 %v691_v0, %v690_v61  ;;  %v593_v5 = vadd.f32 %v592_v1, %v591_v60  ;;  %v455_v6 = vpop.f32.mrf.mxu0  ;;  %v956_v34 = vpop.f32.mrf.mxu1  ;;  %v1310_v61 = vadd.f32 %v1204_v17, %v503_v8  ;;  %v1326_v10 = vadd.f32 %v1270_v16, %v1204_v17 }
  0xec   : > { %v693_v11 = vsel %vm550_vm1, %v657_v2, 0.0  ;;  %561 = vst.msk [vmem:[%s1209_s14 + $0x50] sm:$0xff] %vm550_vm1, %v464_v3  ;;  %v456_v12 = vadd.f32 %v1204_v17, %v455_v6  ;;  %v662_v30 = vmul.f32 %v464_v3, %v464_v3  ;;  %v602_v45 = vsel %vm550_vm1, %v464_v3, 0.0 }
  0xed   : > { %v595_v13 = vadd.f32 %v594_v9, %v593_v5  ;;  %v694_v14 = vadd.f32 %v693_v11, %v692_v4  ;;  %v941_v15 = vpop.f32.mrf.mxu0  ;;  %v519_v44 = vpop.f32.mrf.mxu1  ;;  %571 = vst.msk [vmem:[%s1209_s14 + $0xa0] sm:$0xff] %vm550_vm1, %v1310_v61  ;;  %574 = vst.msk [vmem:[%s1209_s14 + $0xb8] sm:$0xff] %vm550_vm1, %v1326_v10 }
  0xee   : > { %559 = vst.msk [vmem:[%s1209_s14 + $0x40] sm:$0xff] %vm550_vm1, %v456_v12  ;;  %v660_v20 = vmul.f32 %v456_v12, %v456_v12  ;;  %v467_v21 = vadd.f32 %v941_v15, %v1204_v17  ;;  %v598_v28 = vsel %vm550_vm1, %v456_v12, 0.0  ;;  %v703_v53 = vsel %vm550_vm1, %v662_v30, 0.0 }
  0xef   : > { %v696_v22 = vadd.f32 %v695_v18, %v694_v14  ;;  %v597_v23 = vadd.f32 %v596_v19, %v595_v13  ;;  %v458_v24 = vpop.f32.mrf.mxu0  ;;  %v957_v52 = vpop.f32.mrf.mxu1  ;;  %v507_v13 = vadd.f32 %v1204_v17, %v506_v26  ;;  %v520_v26 = vadd.f32 %v1204_v17, %v519_v44 }
  0xf0   : > { %562 = vst.msk [vmem:[%s1209_s14 + $0x58] sm:$0xff] %vm550_vm1, %v467_v21  ;;  %v459_v29 = vadd.f32 %v1204_v17, %v458_v24  ;;  %v699_v35 = vsel %vm550_vm1, %v660_v20, 0.0  ;;  %v663_v46 = vmul.f32 %v467_v21, %v467_v21  ;;  %v604_v55 = vsel %vm550_vm1, %v467_v21, 0.0 }
  0xf1   : > { %v599_v31 = vadd.f32 %v598_v28, %v597_v23  ;;  %v698_v32 = vadd.f32 %v697_v27, %v696_v22  ;;  %v944_v33 = vpop.f32.mrf.mxu0  ;;  %v522_v62 = vpop.f32.mrf.mxu1  ;;  %v1335_v20 = vadd.f32 %v956_v34, %v1204_v17  ;;  %572 = vst.msk [vmem:[%s1209_s14 + $0xa8] sm:$0xff] %vm550_vm1, %v507_v13  ;;  %v668_v24 = vmul.f32 %v1244_v54, %v1244_v54 }
  0xf2   : > { %560 = vst.msk [vmem:[%s1209_s14 + $0x48] sm:$0xff] %vm550_vm1, %v459_v29  ;;  %v600_v36 = vsel %vm550_vm1, %v459_v29, 0.0  ;;  %v661_v38 = vmul.f32 %v459_v29, %v459_v29  ;;  %v480_v39 = vadd.f32 %v944_v33, %v1204_v17  ;;  %v705_v63 = vsel %vm550_vm1, %v663_v46, 0.0  ;;  %575 = vst.msk [vmem:[%s1209_s14 + $0xc0] sm:$0xff] %vm550_vm1, %v520_v26 }
  0xf3   : > { %v700_v40 = vadd.f32 %v699_v35, %v698_v32  ;;  %v601_v41 = vadd.f32 %v600_v36, %v599_v31  ;;  %v471_v42 = vpop.f32.mrf.mxu0  ;;  %v960_v5 = vpop.f32.mrf.mxu1  ;;  %577 = vst.msk [vmem:[%s1209_s14 + $0xd0] sm:$0xff] %vm550_vm1, %v1335_v20  ;;  %v1348_v29 = vadd.f32 %v957_v52, %v1204_v17  ;;  %v614_v32 = vsel %vm550_vm1, %v1244_v54, 0.0 }
  0xf4   : > { %v701_v47 = vsel %vm550_vm1, %v661_v38, 0.0  ;;  %565 = vst.msk [vmem:[%s1209_s14 + $0x70] sm:$0xff] %vm550_vm1, %v480_v39  ;;  %v472_v48 = vadd.f32 %v1204_v17, %v471_v42  ;;  %v666_v2 = vmul.f32 %v480_v39, %v480_v39  ;;  %v610_v15 = vsel %vm550_vm1, %v480_v39, 0.0 }
  0xf5   : > { %v603_v49 = vadd.f32 %v602_v45, %v601_v41  ;;  %v702_v50 = vadd.f32 %v701_v47, %v700_v40  ;;  %v945_v51 = vpop.f32.mrf.mxu0  ;;  %v535_v14 = vpop.f32.mrf.mxu1  ;;  %v669_v33 = vmul.f32 %v1278_v25, %v1278_v25  ;;  %v523_v34 = vadd.f32 %v1204_v17, %v522_v62  ;;  %578 = vst.msk [vmem:[%s1209_s14 + $0xd8] sm:$0xff] %vm550_vm1, %v1348_v29 }
  0xf6   : > { %563 = vst.msk [vmem:[%s1209_s14 + $0x60] sm:$0xff] %vm550_vm1, %v472_v48  ;;  %v664_v56 = vmul.f32 %v472_v48, %v472_v48  ;;  %v483_v57 = vadd.f32 %v945_v51, %v1204_v17  ;;  %v606_v0 = vsel %vm550_vm1, %v472_v48, 0.0  ;;  %v711_v22 = vsel %vm550_vm1, %v666_v2, 0.0 }
  0xf7   : > { %v704_v58 = vadd.f32 %v703_v53, %v702_v50  ;;  %v605_v59 = vadd.f32 %v604_v55, %v603_v49  ;;  %v474_v60 = vpop.f32.mrf.mxu0  ;;  %v961_v30 = vpop.f32.mrf.mxu1  ;;  %v670_v38 = vmul.f32 %v1228_v37, %v1228_v37  ;;  %v715_v39 = vsel %vm550_vm1, %v668_v24, 0.0  ;;  %576 = vst.msk [vmem:[%s1209_s14 + $0xc8] sm:$0xff] %vm550_vm1, %v523_v34 }
  0xf8   : > { %566 = vst.msk [vmem:[%s1209_s14 + $0x78] sm:$0xff] %vm550_vm1, %v483_v57  ;;  %v475_v1 = vadd.f32 %v1204_v17, %v474_v60  ;;  %v707_v6 = vsel %vm550_vm1, %v664_v56, 0.0  ;;  %v667_v18 = vmul.f32 %v483_v57, %v483_v57  ;;  %v612_v23 = vsel %vm550_vm1, %v483_v57, 0.0 }
  0xf9   : > { %v607_v3 = vadd.f32 %v606_v0, %v605_v59  ;;  %v706_v4 = vadd.f32 %v705_v63, %v704_v58  ;;  %v616_v54 = vsel %vm550_vm1, %v1278_v25, 0.0  ;;  %v1369_v40 = vadd.f32 %v960_v5, %v1204_v17  ;;  %v538_v45 = vpop.f32.mrf.mxu1 }
  0xfa   : > { %564 = vst.msk [vmem:[%s1209_s14 + $0x68] sm:$0xff] %vm550_vm1, %v475_v1  ;;  %v608_v8 = vsel %vm550_vm1, %v475_v1, 0.0  ;;  %v665_v9 = vmul.f32 %v475_v1, %v475_v1  ;;  %v713_v31 = vsel %vm550_vm1, %v667_v18, 0.0  ;;  %v536_v44 = vadd.f32 %v1204_v17, %v535_v14 }
  0xfb   : > { %v708_v11 = vadd.f32 %v707_v6, %v706_v4  ;;  %v609_v12 = vadd.f32 %v608_v8, %v607_v3  ;;  %v618_v46 = vsel %vm550_vm1, %v1228_v37, 0.0  ;;  %v671_v47 = vmul.f32 %v1260_v7, %v1260_v7  ;;  %581 = vst.msk [vmem:[%s1209_s14 + $0xf0] sm:$0xff] %vm550_vm1, %v1369_v40 }
  0xfc   : > { %v709_v19 = vsel %vm550_vm1, %v665_v9, 0.0  ;;  %v717_v48 = vsel %vm550_vm1, %v669_v33, 0.0  ;;  %v1381_v25 = vadd.f32 %v961_v30, %v1204_v17  ;;  %579 = vst.msk [vmem:[%s1209_s14 + $0xe0] sm:$0xff] %vm550_vm1, %v536_v44  ;;  %v719_v51 = vsel %vm550_vm1, %v670_v38, 0.0 }
  0xfd   : > { %v611_v16 = vadd.f32 %v610_v15, %v609_v12  ;;  %v710_v21 = vadd.f32 %v709_v19, %v708_v11  ;;  %v620_v37 = vsel %vm550_vm1, %v1260_v7, 0.0  ;;  %v672_v52 = vmul.f32 %v1310_v61, %v1310_v61 }
  0xfe   : > { %582 = vst.msk [vmem:[%s1209_s14 + $0xf8] sm:$0xff] %vm550_vm1, %v1381_v25  ;;  %v539_v53 = vadd.f32 %v1204_v17, %v538_v45  ;;  %v721_v57 = vsel %vm550_vm1, %v671_v47, 0.0  ;;  %v622_v58 = vsel %vm550_vm1, %v1310_v61, 0.0  ;;  %v673_v59 = vmul.f32 %v507_v13, %v507_v13 }
  0xff   : > { %v712_v27 = vadd.f32 %v711_v22, %v710_v21  ;;  %v613_v28 = vadd.f32 %v612_v23, %v611_v16  ;;  %v674_v62 = vmul.f32 %v1294_v43, %v1294_v43  ;;  %v723_v63 = vsel %vm550_vm1, %v672_v52, 0.0 }
 0x100   : > { %580 = vst.msk [vmem:[%s1209_s14 + $0xe8] sm:$0xff] %vm550_vm1, %v539_v53  ;;  %v624_v0 = vsel %vm550_vm1, %v507_v13, 0.0  ;;  %v626_v2 = vsel %vm550_vm1, %v1294_v43, 0.0  ;;  %v675_v61 = vmul.f32 %v1326_v10, %v1326_v10  ;;  %v725_v3 = vsel %vm550_vm1, %v673_v59, 0.0 }
 0x101   : > { %v615_v35 = vadd.f32 %v614_v32, %v613_v28  ;;  %v714_v36 = vadd.f32 %v713_v31, %v712_v27  ;;  %v727_v6 = vsel %vm550_vm1, %v674_v62, 0.0  ;;  %v628_v8 = vsel %vm550_vm1, %v1326_v10, 0.0 }
 0x102   : > { %v676_v9 = vmul.f32 %v520_v26, %v520_v26  ;;  %v729_v13 = vsel %vm550_vm1, %v675_v61, 0.0  ;;  %v630_v14 = vsel %vm550_vm1, %v520_v26, 0.0  ;;  %v677_v43 = vmul.f32 %v523_v34, %v523_v34 }
 0x103   : > { %v617_v41 = vadd.f32 %v616_v54, %v615_v35  ;;  %v716_v42 = vadd.f32 %v715_v39, %v714_v36  ;;  %v678_v19 = vmul.f32 %v1335_v20, %v1335_v20  ;;  %v632_v21 = vsel %vm550_vm1, %v523_v34, 0.0 }
 0x104   : > { %v731_v16 = vsel %vm550_vm1, %v676_v9, 0.0  ;;  %v634_v10 = vsel %vm550_vm1, %v1335_v20, 0.0  ;;  %v679_v24 = vmul.f32 %v1348_v29, %v1348_v29  ;;  %v733_v26 = vsel %vm550_vm1, %v677_v43, 0.0 }
 0x105   : > { %v619_v49 = vadd.f32 %v618_v46, %v617_v41  ;;  %v718_v50 = vadd.f32 %v717_v48, %v716_v42  ;;  %v735_v30 = vsel %vm550_vm1, %v678_v19, 0.0  ;;  %v636_v31 = vsel %vm550_vm1, %v1348_v29, 0.0 }
 0x106   : > { %v680_v32 = vmul.f32 %v536_v44, %v536_v44  ;;  %v737_v35 = vsel %vm550_vm1, %v679_v24, 0.0  ;;  %v638_v36 = vsel %vm550_vm1, %v536_v44, 0.0  ;;  %v681_v20 = vmul.f32 %v539_v53, %v539_v53 }
 0x107   : > { %v720_v55 = vadd.f32 %v719_v51, %v718_v50  ;;  %v621_v56 = vadd.f32 %v620_v37, %v619_v49  ;;  %v682_v54 = vmul.f32 %v1369_v40, %v1369_v40  ;;  %v640_v42 = vsel %vm550_vm1, %v539_v53, 0.0 }
 0x108   : > { %v739_v41 = vsel %vm550_vm1, %v680_v32, 0.0  ;;  %v642_v46 = vsel %vm550_vm1, %v1369_v40, 0.0  ;;  %v683_v47 = vmul.f32 %v1381_v25, %v1381_v25  ;;  %v741_v44 = vsel %vm550_vm1, %v681_v20, 0.0 }
 0x109   : > { %v623_v60 = vadd.f32 %v622_v58, %v621_v56  ;;  %v722_v7 = vadd.f32 %v721_v57, %v720_v55  ;;  %v743_v50 = vsel %vm550_vm1, %v682_v54, 0.0  ;;  %v644_v51 = vsel %vm550_vm1, %v1381_v25, 0.0 }
 0x10a   : > { %v745_v53 = vsel %vm550_vm1, %v683_v47, 0.0 }
 0x10b   : > { %v724_v17 = vadd.f32 %v723_v63, %v722_v7  ;;  %v625_v1 = vadd.f32 %v624_v0, %v623_v60 }
 0x10d   : > { %v627_v4 = vadd.f32 %v626_v2, %v625_v1  ;;  %v726_v5 = vadd.f32 %v725_v3, %v724_v17 }
 0x10f   : > { %v728_v11 = vadd.f32 %v727_v6, %v726_v5  ;;  %v629_v12 = vadd.f32 %v628_v8, %v627_v4 }
 0x111   : > { %v631_v15 = vadd.f32 %v630_v14, %v629_v12  ;;  %v730_v18 = vadd.f32 %v729_v13, %v728_v11 }
 0x113   : > { %v732_v22 = vadd.f32 %v731_v16, %v730_v18  ;;  %v633_v23 = vadd.f32 %v632_v21, %v631_v15 }
 0x115   : > { %v635_v27 = vadd.f32 %v634_v10, %v633_v23  ;;  %v734_v28 = vadd.f32 %v733_v26, %v732_v22 }
 0x117   : > { %v736_v33 = vadd.f32 %v735_v30, %v734_v28  ;;  %v637_v34 = vadd.f32 %v636_v31, %v635_v27 }
 0x119   : > { %v639_v38 = vadd.f32 %v638_v36, %v637_v34  ;;  %v738_v39 = vadd.f32 %v737_v35, %v736_v33 }
 0x11b   : > { %v740_v45 = vadd.f32 %v739_v41, %v738_v39  ;;  %v641_v29 = vadd.f32 %v640_v42, %v639_v38 }
 0x11d   : > { %v643_v48 = vadd.f32 %v642_v46, %v641_v29  ;;  %v742_v49 = vadd.f32 %v741_v44, %v740_v45 }
 0x11f   : > { %v645_v37 = vadd.f32 %v644_v51, %v643_v48  ;;  %v744_v52 = vadd.f32 %v743_v50, %v742_v49 }
 0x121   : > { %v646_v55 = vrot.slane %v645_v37, 4  ;;  %v746_v56 = vadd.f32 %v745_v53, %v744_v52 }
 0x123   : > { %v647_v40 = vadd.f32 %v646_v55, %v645_v37  ;;  %v747_v57 = vrot.slane %v746_v56, 4 }
 0x125   : > { %v648_v58 = vrot.slane %v647_v40, 2  ;;  %v748_v59 = vadd.f32 %v747_v57, %v746_v56 }
 0x127   : > { %v649_v60 = vadd.f32 %v648_v58, %v647_v40  ;;  %v749_v7 = vrot.slane %v748_v59, 2 }
 0x129   : > { %v650_v62 = vrot.slane %v649_v60, 1  ;;  %v750_v63 = vadd.f32 %v749_v7, %v748_v59 }
 0x12b   : > { %v751_v0 = vrot.slane %v750_v63, 1  ;;  %v651_v25 = vadd.f32 %v650_v62, %v649_v60 }
 0x12d   : > { %v752_v17 = vadd.f32 %v751_v0, %v750_v63 }
 0x12f   : > { %v754_v1 = vsel %vm753_vm2, %v651_v25, %v752_v17 }
 0x130   : > { %756 = vst.msk [vmem:[%s199_s22] sm:$0x3] %vm755_vm3, %v754_v1 }
 0x131   : > { %1033 = shalt.err (!%p1030_p3)
}
 0x132   : > { %s1034_s29 = scalar_lea.hbm %s1445_s30, 32  ;;  %s1038_s12 = scalar_lea.hbm %s1484_s4, 64 }
 0x133   : > { %p1035_p4 = scmp.ne.s32.totalorder %s1445_s30, %s1034_s29  ;;  %p1039_p9 = scmp.lt.s32.totalorder %s1445_s30, %s1484_s4 }
 0x134   : > { %p1040_p10 = scmp.lt.s32.totalorder %s1038_s12, %s1034_s29 }
 0x135   : > { %p1036_p7 = pnand %p1035_p4, %p1143_p5 }
 0x136   : > { %p1041_p11 = por %p1040_p10, %p1039_p9 }
 0x137   : > { %p1037_p8 = pneg %p1036_p7 }
 0x139   : > { %p1042_p12 = pnand %p1041_p11, %p1037_p8 }
 0x13b   : > { %1045 = shalt.err (!%p1042_p12)
}
 0x13c   : > { %964 = dma.vmem_to_hbm [thread:$0]  (%p1143_p5), %s781_s23, 32, %s1445_s30, %s763_s5  }
 0x13d PF: > { %p970_p13 = scmp.ge.s32.totalorder %s1080_s18, 2  ;;  %s800_s19 = sand.u32 1, %s1068_s15  }
 0x13e   : > { %s801_s20 = scalar_lea.sflag [#allocation3], %s800_s19 }
 0x13f   : > { %p967_p0 = pnand %p970_p13, %p1147_p6 }
 0x141   : > { %p968_p1 = pneg %p967_p0 }
 0x143   : > { %1063 = dma.done.wait (%p968_p1), %s801_s20, 32  }
 0x144   : > { %1065 = vsyncadd (%p968_p1), %s801_s20, 4294967264  ;;  %p15_p2 = scmp.ge.s32.totalorder %s1131_s21, 4   ;;  %s1487_s15 = smov %s1072_s16 }
 0x145   : > { %s1488_s16 = smov %s1076_s17  ;;  %s1489_s17 = smov %s1141_s24 }
 0x146   : > { %s1490_s18 = smov %s1131_s21  ;;  %17 = sbr.rel (!%p15_p2) target bundleno = 3 (0x3), region = 79 }
 0x14b   :  { %806 = vsyncpa [#allocation3], 1 }
 0x14c   :  { %808 = vsyncpa [#allocation3 + $0x1], 1 }

</bundles_post_ra>
